<compile_context>
chip_gen: v7x
topology: tpu7x:2x2x1
jax: 0.10.0
libtpu: 0.0.40
codegen_flags: <defaults>
</compile_context>

<pallas_src>
import functools

import jax
import jax.numpy as jnp
from jax.experimental import pallas as pl
from jax.experimental.pallas import tpu as pltpu


# ----------------------------------------------------------------------------- helpers
def _round_up(n, m):
    return ((n + m - 1) // m) * m


def _cdiv(a, b):
    return (a + b - 1) // b


def _choose_tiling(m, max_block=1024):
    """Load-balanced row tiling: multiple-of-8 tiles, no large rounding waste,
    and >=2 tiles for big M so both v7x TensorCores get work."""
    num_tiles = _cdiv(m, max_block)
    if num_tiles == 1 and m >= 512:
        num_tiles = 2
    block_m = _round_up(_cdiv(m, num_tiles), 8)
    m_pad = num_tiles * block_m
    return block_m, m_pad, num_tiles


def _pad_cast(arr, shape, dtype):
    """Zero-pad up to `shape` and cast; no-ops when already aligned."""
    if arr.shape != tuple(shape):
        arr = jnp.pad(arr, tuple((0, t - s) for s, t in zip(arr.shape, shape)))
    if arr.dtype != dtype:
        arr = arr.astype(dtype)
    return arr


# ----------------------------------------------------------------------------- params
def init_params(key, input_size, hidden_size):
    """Deterministic uniform(-stdv, stdv) init, matching reset_parameters()."""
    stdv = 1.0 / hidden_size ** 0.5
    ks = jax.random.split(key, 6)
    shapes = [(input_size, hidden_size), (hidden_size, hidden_size), (hidden_size,),
              (input_size, hidden_size), (hidden_size, hidden_size), (hidden_size,)]
    return tuple(
        jax.random.uniform(k, s, dtype=jnp.float32, minval=-stdv, maxval=stdv)
        for k, s in zip(ks, shapes)
    )


def prepare_params(params, *, use_bf16=True):
    """One-time weight prep (hoisted out of the per-step call).

    Zero-padding is load-bearing: padded bias / weight / hidden lanes stay
    exactly zero through sigmoid(0)=0.5 * hx(=0) and tanh(0)=0, so the sliced
    result is exact.
    """
    w_xr, w_hr, b_r, w_xh, w_hh, b_h = params
    input_size, hidden_size = w_xr.shape
    ip = _round_up(input_size, 16)     # sublane/bf16-packing aligned slice point
    hp = _round_up(hidden_size, 16)
    mxu_dtype = jnp.bfloat16 if use_bf16 else jnp.float32

    def pad_w(w, rows, cols):
        return _pad_cast(w.astype(jnp.float32), (rows, cols), jnp.float32)

    # K-fused weights: [w_x ; w_h] per gate, padded, cast once.
    w_r = jnp.concatenate([pad_w(w_xr, ip, hp), pad_w(w_hr, hp, hp)],
                          axis=0).astype(mxu_dtype)            # (ip+hp, hp)
    w_h = jnp.concatenate([pad_w(w_xh, ip, hp), pad_w(w_hh, hp, hp)],
                          axis=0).astype(mxu_dtype)            # (ip+hp, hp)
    b_r_p = _pad_cast(b_r.astype(jnp.float32).reshape(1, hidden_size), (1, hp),
                      jnp.float32)
    b_h_p = _pad_cast(b_h.astype(jnp.float32).reshape(1, hidden_size), (1, hp),
                      jnp.float32)
    return dict(w_r=w_r, b_r=b_r_p, w_h=w_h, b_h=b_h_p,
                input_size=input_size, hidden_size=hidden_size,
                ip=ip, hp=hp, mxu_dtype=mxu_dtype)


# ----------------------------------------------------------------------------- kernels
def _agru_cell(x, hx, a, wr_ref, br_ref, wh_ref, bh_ref, *, ip):
    """One AGRU cell update on a (bm, *) tile. f32 accumulation & elementwise."""
    hp = wr_ref.shape[0] - ip
    mxu_dtype = wr_ref.dtype
    hx_m = hx.astype(mxu_dtype)

    # reset gate: two dots against static slices of the K-fused weight ref.
    pre_r = (jnp.dot(x, wr_ref[pl.ds(0, ip), :],
                     preferred_element_type=jnp.float32)
             + jnp.dot(hx_m, wr_ref[pl.ds(ip, hp), :],
                       preferred_element_type=jnp.float32)
             + br_ref[...])
    r = jax.nn.sigmoid(pre_r)

    # candidate state: x @ w_xh + (r * hx) @ w_hh  (Python precedence of spec).
    pre_h = (jnp.dot(x, wh_ref[pl.ds(0, ip), :],
                     preferred_element_type=jnp.float32)
             + jnp.dot((r * hx).astype(mxu_dtype), wh_ref[pl.ds(ip, hp), :],
                       preferred_element_type=jnp.float32)
             + bh_ref[...])
    h_tilda = jnp.tanh(pre_h)

    # (1 - a) * hx + a * h_tilda, rewritten with a single use of `a`.
    return hx + a * (h_tilda - hx)


def _agru_step_kernel(x_ref, hx_ref, att_ref, wr_ref, br_ref, wh_ref, bh_ref,
                      out_ref, *, ip):
    out_ref[...] = _agru_cell(x_ref[...], hx_ref[...], att_ref[...],
                              wr_ref, br_ref, wh_ref, bh_ref, ip=ip)


def _agru_seq_kernel(x_ref, att_ref, h0_ref, wr_ref, br_ref, wh_ref, bh_ref,
                     out_ref, h_carry, *, ip):
    t = pl.program_id(1)

    @pl.when(t == 0)
    def _():
        h_carry[...] = h0_ref[...]

    hy = _agru_cell(x_ref[0], h_carry[...], att_ref[0],
                    wr_ref, br_ref, wh_ref, bh_ref, ip=ip)
    h_carry[...] = hy          # hidden state never leaves VMEM between steps
    out_ref[0] = hy


# ----------------------------------------------------------------------------- wrappers
def attention_gru_forward(x, hx, att_score, prepared):
    """Single AGRU step (matches AttentionGRU.forward).
    x: (M, I), hx: (M, H), att_score: (M,)  ->  hy: (M, H) f32."""
    m, input_size = x.shape
    hidden_size = hx.shape[1]
    assert input_size == prepared["input_size"]
    assert hidden_size == prepared["hidden_size"]
    ip, hp = prepared["ip"], prepared["hp"]
    mxu_dtype = prepared["mxu_dtype"]
    kp = ip + hp

    block_m, m_pad, num_tiles = _choose_tiling(m)

    x_p = _pad_cast(x, (m_pad, ip), mxu_dtype)
    hx_p = _pad_cast(hx, (m_pad, hp), jnp.float32)
    att_p = _pad_cast(att_score.reshape(m, 1), (m_pad, 1), jnp.float32)

    def row(shape):
        return pl.BlockSpec(shape, lambda i: (i, 0))

    def const(shape):
        return pl.BlockSpec(shape, lambda i: (0, 0))   # resident across M tiles

    out = pl.pallas_call(
        functools.partial(_agru_step_kernel, ip=ip),
        out_shape=jax.ShapeDtypeStruct((m_pad, hp), jnp.float32),
        grid=(num_tiles,),
        in_specs=[
            row((block_m, ip)),     # x (bf16/f32)
            row((block_m, hp)),     # hx (f32)
            row((block_m, 1)),      # att_score (f32)
            const((kp, hp)),        # fused reset-gate weights
            const((1, hp)),         # b_r
            const((kp, hp)),        # fused candidate weights
            const((1, hp)),         # b_h
        ],
        out_specs=row((block_m, hp)),
        compiler_params=pltpu.CompilerParams(
            dimension_semantics=("parallel",)),
    )(x_p, hx_p, att_p, prepared["w_r"], prepared["b_r"],
      prepared["w_h"], prepared["b_h"])

    if (m_pad, hp) != (m, hidden_size):
        out = out[:m, :hidden_size]
    return out


def attention_gru_sequence(xs, att_scores, h0, prepared):
    """Fused DIEN AGRU over T steps (the time loop that wraps this cell).
    xs: (T, M, I), att_scores: (T, M), h0: (M, H)  ->  hy: (T, M, H) f32.
    Hidden state is carried in VMEM scratch across the 'arbitrary' T axis."""
    t_steps, m, input_size = xs.shape
    hidden_size = h0.shape[1]
    assert input_size == prepared["input_size"]
    assert hidden_size == prepared["hidden_size"]
    ip, hp = prepared["ip"], prepared["hp"]
    mxu_dtype = prepared["mxu_dtype"]
    kp = ip + hp

    block_m, m_pad, num_tiles = _choose_tiling(m)

    xs_p = _pad_cast(xs, (t_steps, m_pad, ip), mxu_dtype)
    att_p = _pad_cast(att_scores.reshape(t_steps, m, 1), (t_steps, m_pad, 1),
                      jnp.float32)
    h0_p = _pad_cast(h0, (m_pad, hp), jnp.float32)

    out = pl.pallas_call(
        functools.partial(_agru_seq_kernel, ip=ip),
        out_shape=jax.ShapeDtypeStruct((t_steps, m_pad, hp), jnp.float32),
        grid=(num_tiles, t_steps),                       # T innermost
        in_specs=[
            pl.BlockSpec((1, block_m, ip), lambda i, t: (t, i, 0)),   # x_t
            pl.BlockSpec((1, block_m, 1), lambda i, t: (t, i, 0)),    # att_t
            pl.BlockSpec((block_m, hp), lambda i, t: (i, 0)),         # h0 (t-invariant)
            pl.BlockSpec((kp, hp), lambda i, t: (0, 0)),              # w_r (resident)
            pl.BlockSpec((1, hp), lambda i, t: (0, 0)),               # b_r
            pl.BlockSpec((kp, hp), lambda i, t: (0, 0)),              # w_h (resident)
            pl.BlockSpec((1, hp), lambda i, t: (0, 0)),               # b_h
        ],
        out_specs=pl.BlockSpec((1, block_m, hp), lambda i, t: (t, i, 0)),
        scratch_shapes=[pltpu.VMEM((block_m, hp), jnp.float32)],      # hx carry
        compiler_params=pltpu.CompilerParams(
            dimension_semantics=("parallel", "arbitrary")),
    )(xs_p, att_p, h0_p, prepared["w_r"], prepared["b_r"],
      prepared["w_h"], prepared["b_h"])

    if (m_pad, hp) != (m, hidden_size):
        out = out[:, :m, :hidden_size]
    return out


# ----------------------------------------------------------------------------- references
def reference_forward(x, hx, att_score, params):
    w_xr, w_hr, b_r, w_xh, w_hh, b_h = params
    r = jax.nn.sigmoid(x @ w_xr + hx @ w_hr + b_r)
    h_tilda = jnp.tanh(x @ w_xh + (r * hx) @ w_hh + b_h)
    a = att_score.reshape(-1, 1)
    return (1.0 - a) * hx + a * h_tilda


def reference_sequence(xs, att_scores, h0, params):
    def step(h, inp):
        x_t, a_t = inp
        hy = reference_forward(x_t, h, a_t, params)
        return hy, hy
    _, ys = jax.lax.scan(step, h0, (xs, att_scores))
    return ys


# ----------------------------------------------------------------------------- demo
if __name__ == "__main__":
    mini_step = 8        # rows per mini-step
    input_size = 32      # embed_size * num_pair
    hidden_size = 32
    seq_len = 4          # DIEN time steps for the fused-sequence kernel

    key = jax.random.PRNGKey(0)
    k_p, k_x, k_h, k_a, k_xs, k_as = jax.random.split(key, 6)

    params = init_params(k_p, input_size, hidden_size)
    x = jax.random.normal(k_x, (mini_step, input_size), dtype=jnp.float32)
    hx = jax.random.normal(k_h, (mini_step, hidden_size), dtype=jnp.float32)
    att_score = jax.random.uniform(k_a, (mini_step,), dtype=jnp.float32)

    # ---- single step (matches AttentionGRU.forward exactly) ----
    ref = reference_forward(x, hx, att_score, params)

    prep_bf16 = prepare_params(params, use_bf16=True)    # done once, reused
    hy = jax.block_until_ready(attention_gru_forward(x, hx, att_score, prep_bf16))
    assert hy.shape == (mini_step, hidden_size)
    assert jnp.allclose(hy, ref, atol=3e-2, rtol=3e-2), \
        float(jnp.max(jnp.abs(hy - ref)))

    prep_f32 = prepare_params(params, use_bf16=False)
    hy_f32 = jax.block_until_ready(attention_gru_forward(x, hx, att_score, prep_f32))
    assert jnp.allclose(hy_f32, ref, atol=1e-5, rtol=1e-5), \
        float(jnp.max(jnp.abs(hy_f32 - ref)))

    # ---- fused T-step recurrence (hidden state carried in VMEM) ----
    xs = jax.random.normal(k_xs, (seq_len, mini_step, input_size), dtype=jnp.float32)
    att_seq = jax.random.uniform(k_as, (seq_len, mini_step), dtype=jnp.float32)

    ref_seq = reference_sequence(xs, att_seq, hx, params)

    hy_seq = jax.block_until_ready(attention_gru_sequence(xs, att_seq, hx, prep_f32))
    assert hy_seq.shape == (seq_len, mini_step, hidden_size)
    assert jnp.allclose(hy_seq, ref_seq, atol=1e-4, rtol=1e-4), \
        float(jnp.max(jnp.abs(hy_seq - ref_seq)))

    hy_seq_bf16 = jax.block_until_ready(
        attention_gru_sequence(xs, att_seq, hx, prep_bf16))
    assert jnp.allclose(hy_seq_bf16, ref_seq, atol=5e-2, rtol=5e-2), \
        float(jnp.max(jnp.abs(hy_seq_bf16 - ref_seq)))

    print("KERNEL_OK")
</pallas_src>

<mosaic_0001>
module attributes {stable_mosaic.version = 11 : i64} {
  func.func @_agru_step_kernel(%arg0: i32, %arg1: memref<8x32xbf16, #tpu.memory_space<vmem>>, %arg2: memref<8x32xf32, #tpu.memory_space<vmem>>, %arg3: memref<8x1xf32, #tpu.memory_space<vmem>>, %arg4: memref<64x32xbf16, #tpu.memory_space<vmem>>, %arg5: memref<1x32xf32, #tpu.memory_space<vmem>>, %arg6: memref<64x32xbf16, #tpu.memory_space<vmem>>, %arg7: memref<1x32xf32, #tpu.memory_space<vmem>>, %arg8: memref<8x32xf32, #tpu.memory_space<vmem>>) attributes {dimension_semantics = [#tpu.dimension_semantics<parallel>], iteration_bounds = array<i64: 1>, scalar_prefetch = 0 : i64, scratch_operands = 0 : i64, tpu.core_type = #tpu.core_type<tc>, window_params = [{transform_indices = @transform_0, window_bounds = array<i64: 8, 32>}, {transform_indices = @transform_1, window_bounds = array<i64: 8, 32>}, {transform_indices = @transform_2, window_bounds = array<i64: 8, 1>}, {pipeline_mode = #tpu.pipeline_mode<synchronous>, transform_indices = @transform_3, window_bounds = array<i64: 64, 32>}, {pipeline_mode = #tpu.pipeline_mode<synchronous>, transform_indices = @transform_4, window_bounds = array<i64: 1, 32>}, {pipeline_mode = #tpu.pipeline_mode<synchronous>, transform_indices = @transform_5, window_bounds = array<i64: 64, 32>}, {pipeline_mode = #tpu.pipeline_mode<synchronous>, transform_indices = @transform_6, window_bounds = array<i64: 1, 32>}, {transform_indices = @transform_7, window_bounds = array<i64: 8, 32>}]} {
    %c0 = arith.constant 0 : index
    %c0_0 = arith.constant 0 : index
    %0 = vector.load %arg1[%c0, %c0_0] : memref<8x32xbf16, #tpu.memory_space<vmem>>, vector<8x32xbf16>
    %c0_1 = arith.constant 0 : index
    %c0_2 = arith.constant 0 : index
    %1 = vector.load %arg2[%c0_1, %c0_2] : memref<8x32xf32, #tpu.memory_space<vmem>>, vector<8x32xf32>
    %c0_3 = arith.constant 0 : index
    %c0_4 = arith.constant 0 : index
    %2 = vector.load %arg3[%c0_3, %c0_4] : memref<8x1xf32, #tpu.memory_space<vmem>>, vector<8x1xf32>
    %3 = arith.truncf %1 : vector<8x32xf32> to vector<8x32xbf16>
    %c0_5 = arith.constant 0 : index
    %c0_6 = arith.constant 0 : index
    %4 = vector.load %arg4[%c0_5, %c0_6] : memref<64x32xbf16, #tpu.memory_space<vmem>>, vector<32x32xbf16>
    %cst = arith.constant dense<0.000000e+00> : vector<8x32xf32>
    %5 = tpu.matmul %0, %4, %cst {dimension_numbers = #tpu.dot_dimension_numbers<[1], [0], [0], [1], [0, 0, 1, 1], [], []>} : vector<8x32xbf16>, vector<32x32xbf16>, vector<8x32xf32> -> vector<8x32xf32>
    %c32 = arith.constant 32 : index
    %c0_7 = arith.constant 0 : index
    %6 = vector.load %arg4[%c32, %c0_7] : memref<64x32xbf16, #tpu.memory_space<vmem>>, vector<32x32xbf16>
    %cst_8 = arith.constant dense<0.000000e+00> : vector<8x32xf32>
    %7 = tpu.matmul %3, %6, %cst_8 {dimension_numbers = #tpu.dot_dimension_numbers<[1], [0], [0], [1], [0, 0, 1, 1], [], []>} : vector<8x32xbf16>, vector<32x32xbf16>, vector<8x32xf32> -> vector<8x32xf32>
    %8 = arith.addf %5, %7 : vector<8x32xf32>
    %c0_9 = arith.constant 0 : index
    %c0_10 = arith.constant 0 : index
    %9 = vector.load %arg5[%c0_9, %c0_10] : memref<1x32xf32, #tpu.memory_space<vmem>>, vector<1x32xf32>
    %10 = vector.broadcast %9 : vector<1x32xf32> to vector<8x32xf32>
    %11 = arith.addf %8, %10 : vector<8x32xf32>
    %12 = arith.negf %11 : vector<8x32xf32>
    %13 = math.exp %12 : vector<8x32xf32>
    %cst_11 = arith.constant 1.000000e+00 : f32
    %14 = vector.broadcast %cst_11 : f32 to vector<8x32xf32>
    %15 = arith.addf %14, %13 : vector<8x32xf32>
    %16 = arith.divf %14, %15 : vector<8x32xf32>
    %c0_12 = arith.constant 0 : index
    %c0_13 = arith.constant 0 : index
    %17 = vector.load %arg6[%c0_12, %c0_13] : memref<64x32xbf16, #tpu.memory_space<vmem>>, vector<32x32xbf16>
    %cst_14 = arith.constant dense<0.000000e+00> : vector<8x32xf32>
    %18 = tpu.matmul %0, %17, %cst_14 {dimension_numbers = #tpu.dot_dimension_numbers<[1], [0], [0], [1], [0, 0, 1, 1], [], []>} : vector<8x32xbf16>, vector<32x32xbf16>, vector<8x32xf32> -> vector<8x32xf32>
    %19 = arith.mulf %16, %1 : vector<8x32xf32>
    %20 = arith.truncf %19 : vector<8x32xf32> to vector<8x32xbf16>
    %c32_15 = arith.constant 32 : index
    %c0_16 = arith.constant 0 : index
    %21 = vector.load %arg6[%c32_15, %c0_16] : memref<64x32xbf16, #tpu.memory_space<vmem>>, vector<32x32xbf16>
    %cst_17 = arith.constant dense<0.000000e+00> : vector<8x32xf32>
    %22 = tpu.matmul %20, %21, %cst_17 {dimension_numbers = #tpu.dot_dimension_numbers<[1], [0], [0], [1], [0, 0, 1, 1], [], []>} : vector<8x32xbf16>, vector<32x32xbf16>, vector<8x32xf32> -> vector<8x32xf32>
    %23 = arith.addf %18, %22 : vector<8x32xf32>
    %c0_18 = arith.constant 0 : index
    %c0_19 = arith.constant 0 : index
    %24 = vector.load %arg7[%c0_18, %c0_19] : memref<1x32xf32, #tpu.memory_space<vmem>>, vector<1x32xf32>
    %25 = vector.broadcast %24 : vector<1x32xf32> to vector<8x32xf32>
    %26 = arith.addf %23, %25 : vector<8x32xf32>
    %27 = math.tanh %26 : vector<8x32xf32>
    %28 = arith.subf %27, %1 : vector<8x32xf32>
    %29 = vector.broadcast %2 : vector<8x1xf32> to vector<8x32xf32>
    %30 = arith.mulf %29, %28 : vector<8x32xf32>
    %31 = arith.addf %1, %30 : vector<8x32xf32>
    %c0_20 = arith.constant 0 : index
    %c0_21 = arith.constant 0 : index
    %32 = vector.load %arg8[%c0_20, %c0_21] : memref<8x32xf32, #tpu.memory_space<vmem>>, vector<8x32xf32>
    tpu.vector_store %arg8[%c0_20, %c0_21], %31 {strides = array<i32>} : memref<8x32xf32, #tpu.memory_space<vmem>>, vector<8x32xf32>,
    return
  }
  func.func @transform_0(%arg0: i32) -> (i32, i32) {
    %c0_i32 = arith.constant 0 : i32
    %c0_i32_0 = arith.constant 0 : i32
    return %arg0, %c0_i32 : i32, i32
  }
  func.func @transform_1(%arg0: i32) -> (i32, i32) {
    %c0_i32 = arith.constant 0 : i32
    %c0_i32_0 = arith.constant 0 : i32
    return %arg0, %c0_i32 : i32, i32
  }
  func.func @transform_2(%arg0: i32) -> (i32, i32) {
    %c0_i32 = arith.constant 0 : i32
    %c0_i32_0 = arith.constant 0 : i32
    return %arg0, %c0_i32 : i32, i32
  }
  func.func @transform_3(%arg0: i32) -> (i32, i32) {
    %c0_i32 = arith.constant 0 : i32
    %c0_i32_0 = arith.constant 0 : i32
    %c0_i32_1 = arith.constant 0 : i32
    return %c0_i32, %c0_i32_0 : i32, i32
  }
  func.func @transform_4(%arg0: i32) -> (i32, i32) {
    %c0_i32 = arith.constant 0 : i32
    %c0_i32_0 = arith.constant 0 : i32
    %c0_i32_1 = arith.constant 0 : i32
    return %c0_i32, %c0_i32_0 : i32, i32
  }
  func.func @transform_5(%arg0: i32) -> (i32, i32) {
    %c0_i32 = arith.constant 0 : i32
    %c0_i32_0 = arith.constant 0 : i32
    %c0_i32_1 = arith.constant 0 : i32
    return %c0_i32, %c0_i32_0 : i32, i32
  }
  func.func @transform_6(%arg0: i32) -> (i32, i32) {
    %c0_i32 = arith.constant 0 : i32
    %c0_i32_0 = arith.constant 0 : i32
    %c0_i32_1 = arith.constant 0 : i32
    return %c0_i32, %c0_i32_0 : i32, i32
  }
  func.func @transform_7(%arg0: i32) -> (i32, i32) {
    %c0_i32 = arith.constant 0 : i32
    %c0_i32_0 = arith.constant 0 : i32
    return %arg0, %c0_i32 : i32, i32
  }
}

</mosaic_0001>

<bundles_post_ra>
// kernel: tpu_custom_call.1
= control target key start
LH: loop header
LB: loop body
LE: loop exit
PB: predicated region body
PF: predicated region fallthrough
CT: control target
= control target key end

     0   :  { %v416_v1 = vmov 0.0   ;;  %vm417_vm0 = vmmov 0   ;;  %vm52_vm1 = vcmask 261120   ;;  %s527_s0 = inlined_call_operand.vmem [shape: bf16[8,32], index: 0, kind: input, shape index: {}]   ;;  %s528_s1 = inlined_call_operand.vmem [shape: f32[8,32], index: 1, kind: input, shape index: {}]   ;;  %s529_s2 = inlined_call_operand.vmem [shape: f32[8,1], index: 2, kind: input, shape index: {}]   ;;  %s530_s3 = inlined_call_operand.vmem [shape: bf16[64,32], index: 3, kind: input, shape index: {}]   ;;  %s531_s4 = inlined_call_operand.vmem [shape: f32[1,32], index: 4, kind: input, shape index: {}]   ;;  %s532_s5 = inlined_call_operand.vmem [shape: bf16[64,32], index: 5, kind: input, shape index: {}]   ;;  %s533_s6 = inlined_call_operand.vmem [shape: f32[1,32], index: 6, kind: input, shape index: {}]   ;;  %s534_s7 = inlined_call_operand.hbm [shape: f32[8,32], index: 7, kind: output, shape index: {}]  }
   0x1   :  { %v378_v0 = vld [vmem:[%s530_s3 + $0x10] sm:$0xff]   ;;  %341 = vmatprep.subr.bf16.mxu0 %v416_v1  ;;  %349 = vmatprep.subr.bf16.mxu1 %v416_v1  ;;  %v379_v2 = vld [vmem:[%s530_s3] sm:$0xff]   ;;  %v380_v3 = vld [vmem:[%s530_s3 + $0x18] sm:$0xff]  }
   0x2   :  { %342 = vmatpush3.bf16.msra.mxu0 %v378_v0  ;;  %345 = vmatprep.mubr.msk.bf16.mxu0 %vm417_vm0, %v416_v1  ;;  %v381_v4 = vld [vmem:[%s530_s3 + $0x8] sm:$0xff]   ;;  %v477_v5 = vld [vmem:[%s528_s1] sm:$0xff] }
   0x3   :  { %350 = vmatpush3.bf16.msra.mxu1 %v379_v2  ;;  %343 = vmatprep.subr.bf16.mxu0 %v416_v1  ;;  %v31_v6 = vpack.c.bf16 %v477_v5, %v477_v5  ;;  %v28_v7 = vld [vmem:[%s527_s0] sm:$0xf] }
   0x4   :  { %351 = vmatprep.subr.bf16.mxu1 %v416_v1  ;;  %353 = vmatprep.mubr.msk.bf16.mxu1 %vm417_vm0, %v416_v1 }
   0x6   :  { %344 = vmatpush3.bf16.msra.mxu0 %v380_v3 }
   0x7   :  { %352 = vmatpush3.bf16.msra.mxu1 %v381_v4  ;;  %357 = vmatprep.subr.bf16.mxu0 %v416_v1 }
   0x8   :  { %12 = vsyncpa [#allocation3], 0  ;;  %365 = vmatprep.subr.bf16.mxu1 %v416_v1  ;;  %v382_v8 = vld [vmem:[%s532_s5] sm:$0xff]   ;;  %v383_v9 = vld [vmem:[%s532_s5 + $0x10] sm:$0xff]   ;;  %v418_v13 = vmov 0  }
   0x9   :  { %346 = vmatmul.mubr.msk.bf16.vlgmr.msra.gmra.mrb[0].mxu0 %vm52_vm1, %v31_v6  ;;  %v384_v10 = vld [vmem:[%s532_s5 + $0x8] sm:$0xff]   ;;  %v385_v11 = vld [vmem:[%s532_s5 + $0x18] sm:$0xff]   ;;  %v30_v12 = vld [vmem:[%s529_s2] sm:$0xff]  ;;  %377 = vset.pattern.permute.xlu0 %v418_v13  ;;  %s419_s5 = smov [#allocation2]  }
   0xa   :  { %354 = vmatmul.mubr.msk.bf16.vlgmr.msra.gmra.mrb[0].mxu1 %vm52_vm1, %v28_v7  ;;  %361 = vmatprep.mubr.msk.bf16.mxu0 %vm417_vm0, %v416_v1  ;;  %v320_v16 = vld [vmem:[%s531_s4] ss:$0 sm:$0xff]  ;;  %s306_s22 = sshll.u32 %s419_s5, 4  ;;  %s307_s22 = int_to_ptr.vmem [resolvable:$true] %s306_s22 }
   0xb   :  { %369 = vmatprep.mubr.msk.bf16.mxu1 %vm417_vm0, %v416_v1  ;;  %366 = vmatpush3.bf16.msra.mxu1 %v382_v8  ;;  %v328_v36 = vld [vmem:[%s533_s6] ss:$0 sm:$0xff]  ;;  %s392_s23 = scalar_lea.vmem %s307_s22, 128  ;;  %p397_p1 = scmp.lt.s32.totalorder %s307_s22, %s307_s22 }
   0xc   :  { %358 = vmatpush3.bf16.msra.mxu0 %v383_v9  ;;  %367 = vmatprep.subr.bf16.mxu1 %v416_v1  ;;  %p393_p0 = scmp.ne.s32.totalorder %s307_s22, %s392_s23  ;;  %p398_p2 = scmp.lt.s32.totalorder %s392_s23, %s392_s23 }
   0xd   :  { %359 = vmatprep.subr.bf16.mxu0 %v416_v1  ;;  %294 = vperm.xlu0 %377, %v30_v12  }
   0xe   :  { %p399_p3 = por %p398_p2, %p397_p1 }
   0xf   :  { %368 = vmatpush3.bf16.msra.mxu1 %v384_v10 }
  0x10   :  { %360 = vmatpush3.bf16.msra.mxu0 %v385_v11  ;;  %p400_p4 = pnand %p399_p3, %p393_p0 }
  0x12   :  { %370 = vmatmul.mubr.msk.bf16.vlgmr.msra.gmra.mrb[4].mxu1 %vm52_vm1, %v28_v7 }
  0x8c   :  { %v295_v43 = vpop.permute.xlu0 %294 }
  0xdc   :  { %v90_v14 = vpop.f32.mrb[0].mxu0 }
  0xdd   :  { %v145_v15 = vpop.f32.mrb[0].mxu1  ;;  %v347_v17 = vpop.f32.mrb[1].mxu0 }
  0xde   :  { %v146_v18 = vadd.f32 %v145_v15, %v90_v14  ;;  %v355_v19 = vpop.f32.mrb[1].mxu1  ;;  %v93_v20 = vpop.f32.mrb[2].mxu0 }
  0xdf   :  { %v148_v21 = vpop.f32.mrb[2].mxu1  ;;  %v348_v22 = vpop.f32.mrb[3].mxu0 }
  0xe0   :  { %v158_v23 = vadd.f32 %v320_v16, %v146_v18  ;;  %v356_v24 = vpop.f32.mrb[3].mxu1 }
  0xe2   :  { %v321_v25 = vmul.f32 -1.442695, %v158_v23 }
  0xe4   :  { %386 = vpow2.f32 %v321_v25 }
  0xe5   :  { %v276_v31 = vpop.f32.mrb[4].mxu1 }
  0xe6   :  { %v371_v32 = vpop.f32.mrb[5].mxu1 }
  0xe7   :  { %v279_v33 = vpop.f32.mrb[6].mxu1 }
  0xe8   :  { %v372_v34 = vpop.f32.mrb[7].mxu1 }
  0xee   :  { %v387_v26 = vpop.eup %386 }
  0xef   :  { %v162_v27 = vadd.f32 1.0, %v387_v26 }
  0xf1   :  { %388 = vrcp.f32 %v162_v27 }
  0xfb   :  { %v389_v28 = vpop.eup %388 }
  0xfc   :  { %v169_v29 = vmul.f32 %v389_v28, %v477_v5 }
  0xfe   :  { %v170_v30 = vpack.c.bf16 %v169_v29, %v169_v29 }
 0x100   :  { %362 = vmatmul.mubr.msk.bf16.vlgmr.msra.gmra.mrb[4].mxu0 %vm52_vm1, %v170_v30 }
 0x1d3   :  { %v224_v35 = vpop.f32.mrb[4].mxu0 }
 0x1d4   :  { %v277_v37 = vadd.f32 %v276_v31, %v224_v35  ;;  %v363_v38 = vpop.f32.mrb[5].mxu0 }
 0x1d5   :  { %v227_v39 = vpop.f32.mrb[6].mxu0 }
 0x1d6   :  { %v289_v40 = vadd.f32 %v328_v36, %v277_v37  ;;  %v364_v41 = vpop.f32.mrb[7].mxu0 }
 0x1d8   :  { %390 = vtanh.f32 %v289_v40 }
 0x1e2   :  { %v391_v42 = vpop.eup %390 }
 0x1e3   :  { %v291_v44 = vsub.f32 %v391_v42, %v477_v5 }
 0x1e5   :  { %v297_v45 = vmul.f32 %v295_v43, %v291_v44 }
 0x1e7   :  { %v298_v46 = vadd.f32 %v297_v45, %v477_v5 }
 0x1e9   :  { %299 = vst.msk [vmem:[#allocation2] sm:$0xff] %vm52_vm1, %v298_v46 }
 0x1ea   :  { %403 = shalt.err (!%p400_p4)
}
 0x1eb   :  { %s404_s25 = scalar_lea.hbm %s534_s7, 128 }
 0x1ec   :  { %p405_p5 = scmp.ne.s32.totalorder %s534_s7, %s404_s25  ;;  %p408_p6 = scmp.lt.u32.totalorder %s404_s25, %s534_s7 }
 0x1ee   :  { %p410_p7 = pnand %p408_p6, %p405_p5 }
 0x1f0   :  { %413 = shalt.err (!%p410_p7)
}
 0x1f1   :  { %309 = dma.vmem_to_hbm [thread:$0]  %s307_s22, 128, %s534_s7, [#allocation3]  }
 0x1f2   :  { %414 = dma.done.wait [#allocation3], 128  }
 0x1f3   :  { %415 = vsyncadd [#allocation3], 4294967168 }
 0x1f4   :  { %313 = vsyncpa [#allocation3], 1 }

</bundles_post_ra>
